<compile_context>
chip_gen: v7x
topology: tpu7x:2x2x1
jax: 0.10.0
libtpu: 0.0.40
codegen_flags: <defaults>
</compile_context>

<pallas_src>
import jax
import jax.numpy as jnp
from jax.experimental import pallas as pl
from jax.experimental.pallas import tpu as pltpu


def _mlp_kernel(x_ref, p_ref, o_ref):
    # x_ref: (1, B_pad)   -- batch on the lane axis (lane-dense)
    # p_ref: (H, 4)       -- columns: [w1, b1, w2, b2 (broadcast along H)]
    # o_ref: (1, B_pad)   -- lane-dense output
    x = x_ref[...]                        # (1, Bp)
    w1 = p_ref[:, 0:1]                    # (H, 1)
    b1 = p_ref[:, 1:2]                    # (H, 1)
    w2 = p_ref[:, 2:3]                    # (H, 1)
    b2 = p_ref[0:1, 3:4]                  # (1, 1)

    # Hidden layer (n_feature == 1): h[j, b] = relu(w1[j] * x[b] + b1[j])
    # Pure VPU broadcast multiply-add; h is (H, Bp) = full (8,128)-aligned vregs.
    h = jnp.maximum(w1 * x + b1, 0.0)     # (H, Bp)

    # Output layer (n_output == 1): y[b] = sum_j h[j, b] * w2[j] + b2
    # VPU multiply + XLU sublane reduction; result stays lane-dense.
    y = jnp.sum(h * w2, axis=0, keepdims=True) + b2   # (1, Bp)

    o_ref[...] = y.astype(o_ref.dtype)


def net_forward(x, w1, b1, w2, b2):
    """Two-layer MLP forward pass (n_feature == n_output == 1) as one Pallas kernel.

    Args:
      x:  (B, 1) float32 input
      w1: (1, H) float32  -- hidden weight (transposed vs. torch's (H, 1))
      b1: (H,)   float32  -- hidden bias
      w2: (H, 1) float32  -- predict weight (transposed vs. torch's (1, H))
      b2: (1,)   float32  -- predict bias
    Returns:
      (B, 1) float32 output
    """
    B, F = x.shape
    H = w1.shape[1]
    O = w2.shape[1]
    if F != 1 or O != 1:
        # TODO(synk): general n_feature / n_output would need a real matmul path;
        # the spec's instance (x = linspace(...).unsqueeze(1)) has F == O == 1.
        raise NotImplementedError("kernel specialized to n_feature == n_output == 1")

    # Pad batch to a multiple of 128 so it fills the lane axis exactly.
    B_pad = max(128, ((B + 127) // 128) * 128)

    # Lane-dense input row: (1, B_pad). Padded lanes are zero (sliced off below).
    x_row = jnp.zeros((1, B_pad), jnp.float32).at[0, :B].set(x[:, 0])

    # Single fused parameter slab (H, 4): columns = [w1, b1, w2, b2-broadcast].
    params = jnp.stack(
        [
            w1[0, :],                                   # (H,)
            b1,                                         # (H,)
            w2[:, 0],                                   # (H,)
            jnp.full((H,), b2[0], dtype=jnp.float32),   # (H,) broadcast of scalar b2
        ],
        axis=1,
    ).astype(jnp.float32)                               # (H, 4)

    y_row = pl.pallas_call(
        _mlp_kernel,
        out_shape=jax.ShapeDtypeStruct((1, B_pad), jnp.float32),
        # No grid: single invocation, whole arrays resident in VMEM -> no
        # per-step pipeline bookkeeping, no double buffering.
        in_specs=[
            pl.BlockSpec(memory_space=pltpu.MemorySpace.VMEM),  # x_row
            pl.BlockSpec(memory_space=pltpu.MemorySpace.VMEM),  # params slab
        ],
        out_specs=pl.BlockSpec(memory_space=pltpu.MemorySpace.VMEM),
    )(x_row, params)

    # Back to the PyTorch (B, 1) layout; drop the lane padding.
    return y_row[0, :B].reshape(B, 1)


def init_params(key, n_feature, n_hidden, n_output):
    """Deterministic synthetic init mimicking torch.nn.Linear's U(-1/sqrt(in), 1/sqrt(in))."""
    k1, k2, k3, k4 = jax.random.split(key, 4)
    lim1 = 1.0 / jnp.sqrt(jnp.float32(n_feature))
    lim2 = 1.0 / jnp.sqrt(jnp.float32(n_hidden))
    w1 = jax.random.uniform(k1, (n_feature, n_hidden), jnp.float32, -lim1, lim1)
    b1 = jax.random.uniform(k2, (n_hidden,), jnp.float32, -lim1, lim1)
    w2 = jax.random.uniform(k3, (n_hidden, n_output), jnp.float32, -lim2, lim2)
    b2 = jax.random.uniform(k4, (n_output,), jnp.float32, -lim2, lim2)
    return w1, b1, w2, b2


if __name__ == "__main__":
    key = jax.random.PRNGKey(0)

    # Shapes implied by the reference script: x = linspace(-3, 3, 100).unsqueeze(1)
    # -> batch=100, n_feature=1. Pick n_hidden=32, n_output=1.
    B, n_feature, n_hidden, n_output = 100, 1, 32, 1

    x = jnp.linspace(-3.0, 3.0, B, dtype=jnp.float32).reshape(B, 1)
    w1, b1, w2, b2 = init_params(key, n_feature, n_hidden, n_output)

    y = net_forward(x, w1, b1, w2, b2)
    jax.block_until_ready(y)

    # Pure-JAX reference check of forward semantics.
    h_ref = jnp.maximum(x @ w1 + b1[None, :], 0.0)
    y_ref = h_ref @ w2 + b2[None, :]
    assert y.shape == (B, n_output)
    assert jnp.allclose(y, y_ref, atol=1e-5, rtol=1e-5)

    print("KERNEL_OK")
</pallas_src>

<mosaic_0001>
module attributes {stable_mosaic.version = 11 : i64} {
  func.func @_mlp_kernel(%arg0: memref<1x128xf32, #tpu.memory_space<vmem>>, %arg1: memref<32x4xf32, #tpu.memory_space<vmem>>, %arg2: memref<1x128xf32, #tpu.memory_space<vmem>>) attributes {dimension_semantics = [], scalar_prefetch = 0 : i64, scratch_operands = 0 : i64, tpu.core_type = #tpu.core_type<tc>} {
    %c0 = arith.constant 0 : index
    %c0_0 = arith.constant 0 : index
    %0 = vector.load %arg0[%c0, %c0_0] : memref<1x128xf32, #tpu.memory_space<vmem>>, vector<1x128xf32>
    %c0_1 = arith.constant 0 : index
    %c0_2 = arith.constant 0 : index
    %1 = vector.load %arg1[%c0_1, %c0_2] : memref<32x4xf32, #tpu.memory_space<vmem>>, vector<32x1xf32>
    %c0_3 = arith.constant 0 : index
    %c1 = arith.constant 1 : index
    %2 = vector.load %arg1[%c0_3, %c1] : memref<32x4xf32, #tpu.memory_space<vmem>>, vector<32x1xf32>
    %c0_4 = arith.constant 0 : index
    %c2 = arith.constant 2 : index
    %3 = vector.load %arg1[%c0_4, %c2] : memref<32x4xf32, #tpu.memory_space<vmem>>, vector<32x1xf32>
    %c0_5 = arith.constant 0 : index
    %c3 = arith.constant 3 : index
    %4 = vector.load %arg1[%c0_5, %c3] : memref<32x4xf32, #tpu.memory_space<vmem>>, vector<1x1xf32>
    %5 = vector.broadcast %1 : vector<32x1xf32> to vector<32x128xf32>
    %6 = vector.broadcast %0 : vector<1x128xf32> to vector<32x128xf32>
    %7 = arith.mulf %5, %6 : vector<32x128xf32>
    %8 = vector.broadcast %2 : vector<32x1xf32> to vector<32x128xf32>
    %9 = arith.addf %7, %8 : vector<32x128xf32>
    %cst = arith.constant 0.000000e+00 : f32
    %10 = vector.broadcast %cst : f32 to vector<32x128xf32>
    %11 = arith.maximumf %9, %10 : vector<32x128xf32>
    %12 = vector.broadcast %3 : vector<32x1xf32> to vector<32x128xf32>
    %13 = arith.mulf %11, %12 : vector<32x128xf32>
    %cst_6 = arith.constant dense<0.000000e+00> : vector<128xf32>
    %14 = vector.multi_reduction <add>, %13, %cst_6 [0] : vector<32x128xf32> to vector<128xf32>
    %15 = vector.shape_cast %14 : vector<128xf32> to vector<1x128xf32>
    %16 = vector.broadcast %4 : vector<1x1xf32> to vector<1x128xf32>
    %17 = arith.addf %15, %16 : vector<1x128xf32>
    %c0_7 = arith.constant 0 : index
    %c0_8 = arith.constant 0 : index
    %18 = vector.load %arg2[%c0_7, %c0_8] : memref<1x128xf32, #tpu.memory_space<vmem>>, vector<1x128xf32>
    tpu.vector_store %arg2[%c0_7, %c0_8], %17 {strides = array<i32>} : memref<1x128xf32, #tpu.memory_space<vmem>>, vector<1x128xf32>,
    return
  }
}

</mosaic_0001>

<bundles_post_ra>
// kernel: tpu_custom_call.1
= control target key start
LH: loop header
LB: loop body
LE: loop exit
PB: predicated region body
PF: predicated region fallthrough
CT: control target
= control target key end

     0   :  { %v161_v2 = vmov 0   ;;  %s211_s0 = inlined_call_operand.vmem [shape: f32[1,128], index: 0, kind: input, shape index: {}]   ;;  %s212_s1 = inlined_call_operand.vmem [shape: f32[32,4], index: 1, kind: input, shape index: {}]   ;;  %s213_s2 = inlined_call_operand.hbm [shape: f32[1,128], index: 2, kind: output, shape index: {}]  }
   0x1   :  { %v15_v0 = vld [vmem:[%s212_s1 + $0x10] sm:$0xff]  ;;  %v13_v1 = vld [vmem:[%s212_s1] sm:$0xff]  ;;  %129 = vset.pattern.permute.xlu1 %v161_v2  ;;  %128 = vset.pattern.permute.xlu0 %v161_v2 }
   0x2   :  { %30 = vperm.xlu1 %129, %v15_v0   ;;  %20 = vperm.xlu0 %128, %v13_v1  }
   0x3   :  { %7 = vsyncpa [#allocation3], 0  ;;  %v14_v3 = vld [vmem:[%s212_s1 + $0x8] sm:$0xff]  ;;  %v162_v4 = vmov 1   ;;  %v16_v5 = vld [vmem:[%s212_s1 + $0x18] sm:$0xff]  ;;  %v163_v6 = vmov 2  }
   0x4   :  { %v17_v7 = vld [vmem:[%s212_s1] sm:$0x1]  ;;  %v164_v8 = vmov 3  }
   0x5   :  { %v122_v15 = vld [vmem:[%s211_s0] ss:$0 sm:$0xff]  ;;  %s165_s0 = smov [#allocation2]  }
   0x6   :  { %130 = vset.pattern.permute.xlu1 %v162_v4  ;;  %25 = vperm.xlu0 %128, %v14_v3   ;;  %s114_s1 = sshll.u32 %s165_s0, 4  ;;  %s115_s1 = int_to_ptr.vmem [resolvable:$true] %s114_s1 }
   0x7   :  { %49 = vperm.xlu1 %130, %v13_v1   ;;  %s137_s21 = scalar_lea.vmem %s115_s1, 16  ;;  %s141_s22 = scalar_lea.vmem %s115_s1, 32 }
   0x8   :  { %p138_p0 = scmp.ne.s32.totalorder %s115_s1, %s137_s21  ;;  %p142_p1 = scmp.lt.s32.totalorder %s115_s1, %s115_s1 }
   0x9   :  { %p143_p2 = scmp.lt.s32.totalorder %s141_s22, %s137_s21 }
   0xa   :  { %131 = vset.pattern.permute.xlu0 %v162_v4 }
   0xb   :  { %132 = vset.pattern.permute.xlu1 %v161_v2  ;;  %53 = vperm.xlu0 %131, %v14_v3   ;;  %p144_p3 = por %p143_p2, %p142_p1 }
   0xc   :  { %35 = vperm.xlu1 %132, %v16_v5  }
   0xd   :  { %p145_p4 = pnand %p144_p3, %p138_p0 }
   0xf   :  { %61 = vperm.xlu0 %131, %v16_v5  }
  0x10   :  { %133 = vset.pattern.permute.xlu1 %v162_v4 }
  0x11   :  { %57 = vperm.xlu1 %133, %v15_v0  }
  0x13   :  { %135 = vset.pattern.permute.xlu0 %v163_v6 }
  0x14   :  { %77 = vperm.xlu0 %135, %v14_v3  }
  0x15   :  { %134 = vset.pattern.permute.xlu1 %v163_v6 }
  0x16   :  { %73 = vperm.xlu1 %134, %v13_v1  }
  0x18   :  { %136 = vset.pattern.permute.xlu0 %v164_v8 }
  0x19   :  { %103 = vperm.xlu0 %136, %v17_v7  }
  0x1a   :  { %81 = vperm.xlu1 %134, %v15_v0  }
  0x1e   :  { %85 = vperm.xlu1 %134, %v16_v5  }
  0x81   :  { %v31_v9 = vpop.permute.xlu1 %30  ;;  %v21_v10 = vpop.permute.xlu0 %20 }
  0x82   :  { %v44_v16 = vmul.f32 %v122_v15, %v21_v10  ;;  %v46_v20 = vmul.f32 %v122_v15, %v31_v9 }
  0x85   :  { %v26_v11 = vpop.permute.xlu0 %25 }
  0x86   :  { %v50_v12 = vpop.permute.xlu1 %49  ;;  %v45_v17 = vmul.f32 %v122_v15, %v26_v11 }
  0x87   :  { %v64_v21 = vadd.f32 %v50_v12, %v44_v16 }
  0x89   :  { %v68_v26 = vmax.f32 %v64_v21, 0.0 }
  0x8a   :  { %v54_v13 = vpop.permute.xlu0 %53 }
  0x8b   :  { %v36_v14 = vpop.permute.xlu1 %35  ;;  %v65_v22 = vadd.f32 %v54_v13, %v45_v17 }
  0x8c   :  { %v47_v23 = vmul.f32 %v122_v15, %v36_v14 }
  0x8d   :  { %v69_v28 = vmax.f32 %v65_v22, 0.0 }
  0x8e   :  { %v62_v19 = vpop.permute.xlu0 %61 }
  0x8f   :  { %v67_v29 = vadd.f32 %v62_v19, %v47_v23 }
  0x90   :  { %v58_v18 = vpop.permute.xlu1 %57 }
  0x91   :  { %v66_v24 = vadd.f32 %v58_v18, %v46_v20  ;;  %v71_v35 = vmax.f32 %v67_v29, 0.0 }
  0x93   :  { %v78_v27 = vpop.permute.xlu0 %77  ;;  %v70_v30 = vmax.f32 %v66_v24, 0.0 }
  0x94   :  { %v89_v33 = vmul.f32 %v78_v27, %v69_v28 }
  0x95   :  { %v74_v25 = vpop.permute.xlu1 %73 }
  0x96   :  { %v88_v31 = vmul.f32 %v74_v25, %v68_v26 }
  0x98   :  { %v92_v36 = vadd.f32 %v89_v33, %v88_v31  ;;  %v104_v46 = vpop.permute.xlu0 %103 }
  0x99   :  { %v82_v32 = vpop.permute.xlu1 %81 }
  0x9a   :  { %v90_v34 = vmul.f32 %v82_v32, %v70_v30 }
  0x9c   :  { %v93_v38 = vadd.f32 %v92_v36, %v90_v34 }
  0x9d   :  { %v86_v37 = vpop.permute.xlu1 %85 }
  0x9e   :  { %v91_v39 = vmul.f32 %v86_v37, %v71_v35 }
  0xa0   :  { %v94_v40 = vadd.f32 %v93_v38, %v91_v39 }
  0xa2   :  { %v95_v41 = vrot.slane %v94_v40, 4 }
  0xa4   :  { %v96_v42 = vadd.f32 %v95_v41, %v94_v40 }
  0xa6   :  { %v97_v43 = vrot.slane %v96_v42, 2 }
  0xa8   :  { %v98_v44 = vadd.f32 %v97_v43, %v96_v42 }
  0xaa   :  { %v99_v45 = vrot.slane %v98_v44, 1 }
  0xac   :  { %v100_v47 = vadd.f32 %v99_v45, %v98_v44 }
  0xae   :  { %v106_v48 = vadd.f32 %v104_v46, %v100_v47 }
  0xb0   :  { %107 = vst [vmem:[#allocation2] sm:$0x1] %v106_v48 }
  0xb1   :  { %148 = shalt.err (!%p145_p4)
}
  0xb2   :  { %s149_s25 = scalar_lea.hbm %s213_s2, 16 }
  0xb3   :  { %p150_p5 = scmp.ne.s32.totalorder %s213_s2, %s149_s25  ;;  %p153_p6 = scmp.lt.u32.totalorder %s149_s25, %s213_s2 }
  0xb5   :  { %p155_p7 = pnand %p153_p6, %p150_p5 }
  0xb7   :  { %158 = shalt.err (!%p155_p7)
}
  0xb8   :  { %117 = dma.vmem_to_hbm [thread:$0]  %s115_s1, 16, %s213_s2, [#allocation3]  }
  0xb9   :  { %159 = dma.done.wait [#allocation3], 16  }
  0xba   :  { %160 = vsyncadd [#allocation3], 4294967280 }
  0xbb   :  { %121 = vsyncpa [#allocation3], 1 }

</bundles_post_ra>
